<compile_context>
chip_gen: v5e
topology: v5e:2x2
jax: 0.10.0
libtpu: 0.0.40
codegen_flags: <defaults>
</compile_context>

<pallas_src>
import jax
import jax.numpy as jnp
from jax import lax
from jax.experimental import pallas as pl
from jax.experimental.pallas import tpu as pltpu

# Module constants (nn.Conv2d(18, 1, (9, 9)))
C_IN = 18
C_OUT = 1
KH = KW = 9


def _conv_weight_to_toeplitz(weight, H, W):
    """(1, C, KH, KW) conv weight -> dense (C*H*W, OH*OW) Toeplitz matrix.

    A[c*H*W + h*W + w, oh*OW + ow] = weight[0, c, h - oh, w - ow]
    when 0 <= h - oh < KH and 0 <= w - ow < KW, else 0, so that
    x.reshape(B, C*H*W) @ A equals the valid cross-correlation (PyTorch Conv2d).
    """
    OH, OW = H - KH + 1, W - KW + 1
    wk = weight[0].astype(jnp.float32)                       # (C, KH, KW)

    dh = jnp.arange(H)[:, None] - jnp.arange(OH)[None, :]    # (H, OH)
    dw = jnp.arange(W)[:, None] - jnp.arange(OW)[None, :]    # (W, OW)
    vh = (dh >= 0) & (dh < KH)
    vw = (dw >= 0) & (dw < KW)
    dh_c = jnp.clip(dh, 0, KH - 1)
    dw_c = jnp.clip(dw, 0, KW - 1)

    # a5[c, h, oh, w, ow] = wk[c, h - oh, w - ow]  (masked outside the window)
    a5 = wk[:, dh_c[:, :, None, None], dw_c[None, None, :, :]]
    mask = (vh[:, :, None, None] & vw[None, None, :, :])[None]
    a5 = jnp.where(mask, a5, 0.0)                             # (C, H, OH, W, OW)
    return a5.transpose(0, 1, 3, 2, 4).reshape(C_IN * H * W, OH * OW)


def _conv_softmax_kernel(x_ref, a_ref, b_ref, o_ref):
    # x_ref: (B, C*H*W)     VMEM f32  -- whole flattened batch (single step)
    # a_ref: (C*H*W, OH*OW) VMEM bf16 -- Toeplitz-expanded conv weight
    # b_ref: (1,)           SMEM f32  -- conv bias scalar
    # o_ref: (B, OH*OW)     VMEM f32  -- lane-dense output slab
    z = jnp.dot(x_ref[...].astype(jnp.bfloat16), a_ref[...],
                preferred_element_type=jnp.float32) + b_ref[0]
    # softmax over the size-1 out-channel axis: exactly 1.0 for finite z,
    # NaN-propagating otherwise (z - z keeps the NaN/Inf poisoning).
    o_ref[...] = ((z - z) + 1.0).astype(o_ref.dtype)


def make_test_model_forward(weight, bias, input_hw):
    """Build a jitted forward for fixed (weight, bias, H, W).

    The Toeplitz expansion runs exactly once here (weight-only preprocessing),
    not on the per-call critical path.
    """
    H, W = input_hw
    assert H >= KH and W >= KW
    OH, OW = H - KH + 1, W - KW + 1
    CHW = C_IN * H * W
    OHW = OH * OW

    a_bf16 = _conv_weight_to_toeplitz(weight, H, W).astype(jnp.bfloat16)
    bias_f32 = bias.astype(jnp.float32).reshape((1,))

    @jax.jit
    def forward(x):
        B, C, h, w = x.shape
        assert C == C_IN and h == H and w == W
        x_flat = x.reshape(B, CHW)                 # layout plumbing only

        out_flat = pl.pallas_call(
            _conv_softmax_kernel,
            out_shape=jax.ShapeDtypeStruct((B, OHW), jnp.float32),
            # Gridless: whole arrays as single VMEM/SMEM blocks, one kernel
            # invocation, no pipeline -> single-buffered operands.
            in_specs=[
                pl.BlockSpec(memory_space=pltpu.MemorySpace.VMEM),   # x
                pl.BlockSpec(memory_space=pltpu.MemorySpace.VMEM),   # A (bf16)
                pl.BlockSpec(memory_space=pltpu.MemorySpace.SMEM),   # bias
            ],
            out_specs=pl.BlockSpec(memory_space=pltpu.MemorySpace.VMEM),
        )(x_flat, a_bf16, bias_f32)

        return out_flat.reshape(B, C_OUT, OH, OW)

    return forward


def _reference(x, weight, bias):
    y = lax.conv_general_dilated(
        x, weight, window_strides=(1, 1), padding="VALID",
        dimension_numbers=("NCHW", "OIHW", "NCHW"))
    y = y + bias[None, :, None, None]
    return jax.nn.softmax(y, axis=1)


if __name__ == "__main__":
    key = jax.random.PRNGKey(0)
    kx, kw, kb = jax.random.split(key, 3)

    B, H, W = 2, 16, 16
    x = jax.random.normal(kx, (B, C_IN, H, W), dtype=jnp.float32)
    # Deterministic parameters (shapes from nn.Conv2d(18, 1, (9, 9))).
    weight = jax.random.normal(kw, (C_OUT, C_IN, KH, KW), dtype=jnp.float32) * 0.05
    bias = jax.random.normal(kb, (C_OUT,), dtype=jnp.float32) * 0.05

    # Sanity: the (f32) Toeplitz-expanded weight reproduces the conv itself.
    a_f32 = _conv_weight_to_toeplitz(weight, H, W)
    z_ref = lax.conv_general_dilated(
        x, weight, window_strides=(1, 1), padding="VALID",
        dimension_numbers=("NCHW", "OIHW", "NCHW")) + bias[None, :, None, None]
    z_toe = (x.reshape(B, -1) @ a_f32 + bias[0]).reshape(B, C_OUT, H - KH + 1, W - KW + 1)
    assert jnp.allclose(z_toe, z_ref, atol=1e-3, rtol=1e-3)

    forward = make_test_model_forward(weight, bias, (H, W))
    out = jax.block_until_ready(forward(x))

    ref = _reference(x, weight, bias)
    assert out.shape == (B, C_OUT, H - KH + 1, W - KW + 1)
    assert jnp.allclose(out, ref, atol=1e-5, rtol=1e-5)

    print("KERNEL_OK")
</pallas_src>

<mosaic_0001>
module attributes {stable_mosaic.version = 11 : i64} {
  func.func @_conv_softmax_kernel(%arg0: memref<2x4608xf32, #tpu.memory_space<vmem>>, %arg1: memref<4608x64xbf16, #tpu.memory_space<vmem>>, %arg2: memref<1xf32, #tpu.memory_space<smem>>, %arg3: memref<2x64xf32, #tpu.memory_space<vmem>>) attributes {dimension_semantics = [], scalar_prefetch = 0 : i64, scratch_operands = 0 : i64, tpu.core_type = #tpu.core_type<tc>} {
    %c0 = arith.constant 0 : index
    %c0_0 = arith.constant 0 : index
    %0 = vector.load %arg0[%c0, %c0_0] : memref<2x4608xf32, #tpu.memory_space<vmem>>, vector<2x4608xf32>
    %1 = arith.truncf %0 : vector<2x4608xf32> to vector<2x4608xbf16>
    %c0_1 = arith.constant 0 : index
    %c0_2 = arith.constant 0 : index
    %2 = vector.load %arg1[%c0_1, %c0_2] : memref<4608x64xbf16, #tpu.memory_space<vmem>>, vector<4608x64xbf16>
    %cst = arith.constant dense<0.000000e+00> : vector<2x64xf32>
    %3 = tpu.matmul %1, %2, %cst {dimension_numbers = #tpu.dot_dimension_numbers<[1], [0], [0], [1], [0, 0, 1, 1], [], []>} : vector<2x4608xbf16>, vector<4608x64xbf16>, vector<2x64xf32> -> vector<2x64xf32>
    %c0_3 = arith.constant 0 : index
    %4 = memref.load %arg2[%c0_3] : memref<1xf32, #tpu.memory_space<smem>>
    %5 = vector.broadcast %4 : f32 to vector<2x64xf32>
    %6 = arith.addf %3, %5 : vector<2x64xf32>
    %7 = arith.subf %6, %6 : vector<2x64xf32>
    %cst_4 = arith.constant 1.000000e+00 : f32
    %8 = vector.broadcast %cst_4 : f32 to vector<2x64xf32>
    %9 = arith.addf %7, %8 : vector<2x64xf32>
    %c0_5 = arith.constant 0 : index
    %c0_6 = arith.constant 0 : index
    %10 = vector.load %arg3[%c0_5, %c0_6] : memref<2x64xf32, #tpu.memory_space<vmem>>, vector<2x64xf32>
    tpu.vector_store %arg3[%c0_5, %c0_6], %9 {strides = array<i32>} : memref<2x64xf32, #tpu.memory_space<vmem>>, vector<2x64xf32>,
    return
  }
}

</mosaic_0001>

<bundles_post_ra>
// kernel: forward.1
= control target key start
LH: loop header
LB: loop body
LE: loop exit
PB: predicated region body
PF: predicated region fallthrough
CT: control target
= control target key end

     0   :  { %9 = vsyncpa [#allocation4], 0  ;;  %s4419_s15 = smov [#allocation3]   ;;  %s4420_s17 = smov 64   ;;  %s4511_s0 = inlined_call_operand.vmem [shape: f32[2,4608], index: 0, kind: input, shape index: {}]   ;;  %s4512_s1 = inlined_call_operand.hbm [shape: bf16[4608,64], index: 1, kind: input, shape index: {}]   ;;  %s4513_s2 = inlined_call_operand.<no memory space> [shape: f32[1], index: 2, kind: input, shape index: {}]   ;;  %s4514_s3 = inlined_call_operand.vmem [shape: f32[2,64], index: 3, kind: output, shape index: {}]  }
   0x1   :  { %s16_s14 = sshll.u32 %s4512_s1, 4  ;;  %s18_s16 = sshll.u32 %s4419_s15, 4  ;;  %s17_s14 = int_to_ptr.hbm [resolvable:$true] %s16_s14  ;;  %s19_s16 = int_to_ptr.vmem [resolvable:$true] %s18_s16 }
   0x2   :  { %s4421_s18 = smov 4  }
   0x3   :  { %24 = dma.hbm_to_vmem [thread:$0]  %s17_s14, 36864, %s19_s16, [#allocation4], %s4420_s17, %s4420_s17, %s4421_s18  }
   0x4   :  { %4417 = dma.done.wait [#allocation4], 36864  }
   0x5   :  { %4418 = vsyncadd [#allocation4], 4294930432  ;;  %v4109_v0 = vld [vmem:[#allocation3 + $0x38] sm:$0xff]  ;;  %v4108_v4 = vld [vmem:[#allocation3 + $0x30] sm:$0xff]  ;;  %vm2943_vm0 = vcmask 517120  }
   0x6   :  { %v4117_v1 = vld [vmem:[#allocation3 + $0x78] sm:$0xff]  ;;  %2473 = vmatpush.bf16.msra.mxu0 %v4109_v0  ;;  %v4116_v5 = vld [vmem:[#allocation3 + $0x70] sm:$0xff]  ;;  %v4107_v8 = vld [vmem:[#allocation3 + $0x28] sm:$0xff] }
   0x7   :  { %v4125_v2 = vld [vmem:[#allocation3 + $0xb8] sm:$0xff]  ;;  %2486 = vmatpush.bf16.msra.mxu1 %v4117_v1  ;;  %v4124_v6 = vld [vmem:[#allocation3 + $0xb0] sm:$0xff]  ;;  %v4115_v9 = vld [vmem:[#allocation3 + $0x68] sm:$0xff] }
   0x8   :  { %v4133_v3 = vld [vmem:[#allocation3 + $0xf8] sm:$0xff]  ;;  %2499 = vmatpush.bf16.msra.mxu2 %v4125_v2  ;;  %v4132_v7 = vld [vmem:[#allocation3 + $0xf0] sm:$0xff]  ;;  %v4123_v10 = vld [vmem:[#allocation3 + $0xa8] sm:$0xff] }
   0x9   :  { %2512 = vmatpush.bf16.msra.mxu3 %v4133_v3  ;;  %v4131_v11 = vld [vmem:[#allocation3 + $0xe8] sm:$0xff]  ;;  %v4106_v12 = vld [vmem:[#allocation3 + $0x20] sm:$0xff]  ;;  %v4105_v16 = vld [vmem:[#allocation3 + $0x18] sm:$0xff] }
   0xa   :  { %2474 = vmatpush.bf16.msra.mxu0 %v4108_v4  ;;  %v4114_v13 = vld [vmem:[#allocation3 + $0x60] sm:$0xff]  ;;  %v4113_v17 = vld [vmem:[#allocation3 + $0x58] sm:$0xff]  ;;  %v4104_v21 = vld [vmem:[#allocation3 + $0x10] sm:$0xff] }
   0xb   :  { %2487 = vmatpush.bf16.msra.mxu1 %v4116_v5  ;;  %v4122_v14 = vld [vmem:[#allocation3 + $0xa0] sm:$0xff]  ;;  %v4121_v18 = vld [vmem:[#allocation3 + $0x98] sm:$0xff]  ;;  %v4112_v22 = vld [vmem:[#allocation3 + $0x50] sm:$0xff] }
   0xc   :  { %2500 = vmatpush.bf16.msra.mxu2 %v4124_v6  ;;  %v4130_v15 = vld [vmem:[#allocation3 + $0xe0] sm:$0xff]  ;;  %v4129_v19 = vld [vmem:[#allocation3 + $0xd8] sm:$0xff]  ;;  %v4120_v23 = vld [vmem:[#allocation3 + $0x90] sm:$0xff] }
   0xd   :  { %2513 = vmatpush.bf16.msra.mxu3 %v4132_v7  ;;  %v31_v20 = vld [vmem:[%s4511_s0] sm:$0xff]  ;;  %v4128_v24 = vld [vmem:[#allocation3 + $0xd0] sm:$0xff]  ;;  %v4103_v25 = vld [vmem:[#allocation3 + $0x8] sm:$0xff] }
   0xe   :  { %2475 = vmatpush.bf16.msra.mxu0 %v4107_v8  ;;  %49 = vst [vmem:[#allocation1] ss:$4 sm:$0xff] %v31_v20  ;;  %v4111_v26 = vld [vmem:[#allocation3 + $0x48] sm:$0xff]  ;;  %v4102_v29 = vld [vmem:[#allocation3] sm:$0xff]  ;;  %v4141_v38 = vld [vmem:[#allocation3 + $0x138] sm:$0xff] }
   0xf   :  { %2488 = vmatpush.bf16.msra.mxu1 %v4115_v9  ;;  %v4119_v27 = vld [vmem:[#allocation3 + $0x88] sm:$0xff]  ;;  %v4110_v30 = vld [vmem:[#allocation3 + $0x40] sm:$0xff]  ;;  %v4149_v39 = vld [vmem:[#allocation3 + $0x178] sm:$0xff] }
  0x10   :  { %2501 = vmatpush.bf16.msra.mxu2 %v4123_v10  ;;  %v4127_v28 = vld [vmem:[#allocation3 + $0xc8] sm:$0xff]  ;;  %v4118_v36 = vld [vmem:[#allocation3 + $0x80] sm:$0xff]  ;;  %v4157_v40 = vld [vmem:[#allocation3 + $0x1b8] sm:$0xff] }
  0x11   :  { %2514 = vmatpush.bf16.msra.mxu3 %v4131_v11  ;;  %v33_v31 = vld [vmem:[%s4511_s0 + $0x10] sm:$0xff]  ;;  %v4126_v37 = vld [vmem:[#allocation3 + $0xc0] sm:$0xff]  ;;  %v4165_v41 = vld [vmem:[#allocation3 + $0x1f8] sm:$0xff] }
  0x12   :  { %2476 = vmatpush.bf16.msra.mxu0 %v4106_v12  ;;  %v32_v42 = vld [vmem:[%s4511_s0 + $0x8] sm:$0xff]  ;;  %v4140_v47 = vld [vmem:[#allocation3 + $0x130] sm:$0xff]  ;;  %v4139_v51 = vld [vmem:[#allocation3 + $0x128] sm:$0xff] }
  0x13   :  { %2489 = vmatpush.bf16.msra.mxu1 %v4114_v13  ;;  %51 = vst [vmem:[#allocation1 + $0x20] ss:$4 sm:$0xff] %v32_v42  ;;  %v4148_v48 = vld [vmem:[#allocation3 + $0x170] sm:$0xff]  ;;  %v4147_v52 = vld [vmem:[#allocation3 + $0x168] sm:$0xff]  ;;  %v4138_v55 = vld [vmem:[#allocation3 + $0x120] sm:$0xff] }
  0x14   :  { %2502 = vmatpush.bf16.msra.mxu2 %v4122_v14  ;;  %v4156_v49 = vld [vmem:[#allocation3 + $0x1b0] sm:$0xff]  ;;  %v4155_v53 = vld [vmem:[#allocation3 + $0x1a8] sm:$0xff]  ;;  %v4146_v57 = vld [vmem:[#allocation3 + $0x160] sm:$0xff] }
  0x15   :  { %2515 = vmatpush.bf16.msra.mxu3 %v4130_v15  ;;  %v54_v32 = vld.sshfl [vmem:[#allocation1 + $0x10] sm:$0xff pattern:$0x73625140]  ;;  %v52_v33 = vld.sshfl [vmem:[#allocation1] sm:$0xff pattern:$0x73625140] }
  0x16   :  { %2477 = vmatpush.bf16.msra.mxu0 %v4105_v16  ;;  %v55_v34 = vld.sshfl [vmem:[#allocation1 + $0x18] sm:$0xff pattern:$0x73625140]  ;;  %v53_v35 = vld.sshfl [vmem:[#allocation1 + $0x8] sm:$0xff pattern:$0x73625140]  ;;  %v133_v43 = vpack.c.bf16 %v54_v32, %v54_v32  ;;  %v131_v44 = vpack.c.bf16 %v52_v33, %v52_v33 }
  0x17   :  { %2490 = vmatpush.bf16.msra.mxu1 %v4113_v17  ;;  %60 = vst [vmem:[#allocation1] ss:$4 sm:$0xff] %v33_v31  ;;  %v134_v45 = vpack.c.bf16 %v55_v34, %v55_v34  ;;  %v132_v46 = vpack.c.bf16 %v53_v35, %v53_v35  ;;  %v4164_v50 = vld [vmem:[#allocation3 + $0x1f0] sm:$0xff]  ;;  %v4163_v54 = vld [vmem:[#allocation3 + $0x1e8] sm:$0xff]  ;;  %v4154_v62 = vld [vmem:[#allocation3 + $0x1a0] sm:$0xff] }
  0x18   :  { %2503 = vmatpush.bf16.msra.mxu2 %v4121_v18  ;;  %v34_v59 = vld [vmem:[%s4511_s0 + $0x18] sm:$0xff]  ;;  %v4162_v63 = vld [vmem:[#allocation3 + $0x1e0] sm:$0xff]  ;;  %v4137_v0 = vld [vmem:[#allocation3 + $0x118] sm:$0xff] }
  0x19   :  { %2516 = vmatpush.bf16.msra.mxu3 %v4129_v19  ;;  %v4145_v1 = vld [vmem:[#allocation3 + $0x158] sm:$0xff]  ;;  %v4136_v4 = vld [vmem:[#allocation3 + $0x110] sm:$0xff]  ;;  %v4135_v8 = vld [vmem:[#allocation3 + $0x108] sm:$0xff] }
  0x1a   :  { %2478 = vmatpush.bf16.msra.mxu0 %v4104_v21  ;;  %v4454_v56 = vld.sshfl [vmem:[#allocation1 + $0x30] sm:$0xff pattern:$0x73625140]  ;;  %v4456_v58 = vld.sshfl [vmem:[#allocation1 + $0x20] sm:$0xff pattern:$0x73625140] }
  0x1b   :  { %2491 = vmatpush.bf16.msra.mxu1 %v4112_v22  ;;  %v59_v60 = vld.sshfl [vmem:[#allocation1 + $0x38] sm:$0xff pattern:$0x73625140]  ;;  %v57_v61 = vld.sshfl [vmem:[#allocation1 + $0x28] sm:$0xff pattern:$0x73625140]  ;;  %v137_v20 = vpack.c.bf16 %v4454_v56, %v4454_v56  ;;  %v135_v21 = vpack.c.bf16 %v4456_v58, %v4456_v58 }
  0x1c   :  { %2504 = vmatpush.bf16.msra.mxu2 %v4120_v23  ;;  %61 = vst [vmem:[#allocation1 + $0x20] ss:$4 sm:$0xff] %v34_v59  ;;  %v4153_v2 = vld [vmem:[#allocation3 + $0x198] sm:$0xff]  ;;  %v4144_v5 = vld [vmem:[#allocation3 + $0x150] sm:$0xff]  ;;  %v4143_v9 = vld [vmem:[#allocation3 + $0x148] sm:$0xff]  ;;  %v138_v22 = vpack.c.bf16 %v59_v60, %v59_v60  ;;  %v136_v23 = vpack.c.bf16 %v57_v61, %v57_v61 }
  0x1d   :  { %2517 = vmatpush.bf16.msra.mxu3 %v4128_v24  ;;  %v4161_v3 = vld [vmem:[#allocation3 + $0x1d8] sm:$0xff]  ;;  %v4152_v6 = vld [vmem:[#allocation3 + $0x190] sm:$0xff]  ;;  %v4151_v10 = vld [vmem:[#allocation3 + $0x188] sm:$0xff] }
  0x1e   :  { %2479 = vmatpush.bf16.msra.mxu0 %v4103_v25  ;;  %v4160_v7 = vld [vmem:[#allocation3 + $0x1d0] sm:$0xff]  ;;  %v4159_v11 = vld [vmem:[#allocation3 + $0x1c8] sm:$0xff]  ;;  %v4134_v12 = vld [vmem:[#allocation3 + $0x100] sm:$0xff] }
  0x1f   :  { %2492 = vmatpush.bf16.msra.mxu1 %v4111_v26  ;;  %v4142_v13 = vld [vmem:[#allocation3 + $0x140] sm:$0xff]  ;;  %v4173_v16 = vld [vmem:[#allocation3 + $0x238] sm:$0xff]  ;;  %v4172_v24 = vld [vmem:[#allocation3 + $0x230] sm:$0xff] }
  0x20   :  { %2505 = vmatpush.bf16.msra.mxu2 %v4119_v27  ;;  %v4150_v14 = vld [vmem:[#allocation3 + $0x180] sm:$0xff]  ;;  %v4181_v17 = vld [vmem:[#allocation3 + $0x278] sm:$0xff]  ;;  %v4180_v25 = vld [vmem:[#allocation3 + $0x270] sm:$0xff] }
  0x21   :  { %2518 = vmatpush.bf16.msra.mxu3 %v4127_v28  ;;  %v4158_v15 = vld [vmem:[#allocation3 + $0x1c0] sm:$0xff]  ;;  %v4189_v18 = vld [vmem:[#allocation3 + $0x2b8] sm:$0xff]  ;;  %v4188_v26 = vld [vmem:[#allocation3 + $0x2b0] sm:$0xff] }
  0x22   :  { %2480 = vmatpush.bf16.msra.mxu0 %v4102_v29  ;;  %v4197_v19 = vld [vmem:[#allocation3 + $0x2f8] sm:$0xff]  ;;  %v4196_v27 = vld [vmem:[#allocation3 + $0x2f0] sm:$0xff]  ;;  %v4171_v28 = vld [vmem:[#allocation3 + $0x228] sm:$0xff] }
  0x23   :  { %2493 = vmatpush.bf16.msra.mxu1 %v4110_v30  ;;  %v4179_v29 = vld [vmem:[#allocation3 + $0x268] sm:$0xff]  ;;  %v4170_v32 = vld [vmem:[#allocation3 + $0x220] sm:$0xff]  ;;  %v4184_v42 = vld [vmem:[#allocation3 + $0x290] sm:$0xff] }
  0x24   :  { %2506 = vmatpush.bf16.msra.mxu2 %v4118_v36  ;;  %v4187_v30 = vld [vmem:[#allocation3 + $0x2a8] sm:$0xff]  ;;  %v4178_v33 = vld [vmem:[#allocation3 + $0x260] sm:$0xff]  ;;  %v4169_v36 = vld [vmem:[#allocation3 + $0x218] sm:$0xff] }
  0x25   :  { %2519 = vmatpush.bf16.msra.mxu3 %v4126_v37  ;;  %2481 = vmatmul.bf16.vlgmr.msra.gmra.mxu0 %v131_v44  ;;  %v4195_v31 = vld [vmem:[#allocation3 + $0x2e8] sm:$0xff]  ;;  %v4186_v34 = vld [vmem:[#allocation3 + $0x2a0] sm:$0xff]  ;;  %v4177_v37 = vld [vmem:[#allocation3 + $0x258] sm:$0xff] }
  0x26   :  { %2525 = vmatpush.bf16.msrb.mxu0 %v4141_v38  ;;  %2494 = vmatmul.bf16.vlgmr.msra.gmra.mxu1 %v132_v46  ;;  %v4194_v35 = vld [vmem:[#allocation3 + $0x2e0] sm:$0xff]  ;;  %v4185_v38 = vld [vmem:[#allocation3 + $0x298] sm:$0xff]  ;;  %v4167_v44 = vld [vmem:[#allocation3 + $0x208] sm:$0xff] }
  0x27   :  { %2538 = vmatpush.bf16.msrb.mxu1 %v4149_v39  ;;  %2507 = vmatmul.bf16.vlgmr.msra.gmra.mxu2 %v133_v43  ;;  %v4193_v39 = vld [vmem:[#allocation3 + $0x2d8] sm:$0xff]  ;;  %v4192_v43 = vld [vmem:[#allocation3 + $0x2d0] sm:$0xff]  ;;  %v4183_v46 = vld [vmem:[#allocation3 + $0x288] sm:$0xff] }
  0x28   :  { %2551 = vmatpush.bf16.msrb.mxu2 %v4157_v40  ;;  %2520 = vmatmul.bf16.vlgmr.msra.gmra.mxu3 %v134_v45  ;;  %v4168_v40 = vld [vmem:[#allocation3 + $0x210] sm:$0xff]  ;;  %v4175_v45 = vld [vmem:[#allocation3 + $0x248] sm:$0xff]  ;;  %v63_v56 = vld.sshfl [vmem:[#allocation1 + $0x8] sm:$0xff pattern:$0x73625140] }
  0x29   :  { %2564 = vmatpush.bf16.msrb.mxu3 %v4165_v41  ;;  %v4176_v41 = vld [vmem:[#allocation3 + $0x250] sm:$0xff]  ;;  %v4221_v58 = vld [vmem:[#allocation3 + $0x3b8] sm:$0xff] }
  0x2a   :  { %2526 = vmatpush.bf16.msrb.mxu0 %v4140_v47  ;;  %v4191_v47 = vld [vmem:[#allocation3 + $0x2c8] sm:$0xff]  ;;  %v4229_v59 = vld [vmem:[#allocation3 + $0x3f8] sm:$0xff] }
  0x2b   :  { %2539 = vmatpush.bf16.msrb.mxu1 %v4148_v48  ;;  %v4166_v48 = vld [vmem:[#allocation3 + $0x200] sm:$0xff] }
  0x2c   :  { %2552 = vmatpush.bf16.msrb.mxu2 %v4156_v49  ;;  %v4174_v49 = vld [vmem:[#allocation3 + $0x240] sm:$0xff] }
  0x2d   :  { %2565 = vmatpush.bf16.msrb.mxu3 %v4164_v50  ;;  %v4182_v50 = vld [vmem:[#allocation3 + $0x280] sm:$0xff] }
  0x2e   :  { %2527 = vmatpush.bf16.msrb.mxu0 %v4139_v51  ;;  %v4190_v51 = vld [vmem:[#allocation3 + $0x2c0] sm:$0xff] }
  0x2f   :  { %2540 = vmatpush.bf16.msrb.mxu1 %v4147_v52  ;;  %v4205_v52 = vld [vmem:[#allocation3 + $0x338] sm:$0xff] }
  0x30   :  { %2553 = vmatpush.bf16.msrb.mxu2 %v4155_v53  ;;  %v4213_v53 = vld [vmem:[#allocation3 + $0x378] sm:$0xff] }
  0x31   :  { %2566 = vmatpush.bf16.msrb.mxu3 %v4163_v54  ;;  %v62_v54 = vld.sshfl [vmem:[#allocation1] sm:$0xff pattern:$0x73625140] }
  0x32   :  { %2528 = vmatpush.bf16.msrb.mxu0 %v4138_v55  ;;  %v64_v55 = vld.sshfl [vmem:[#allocation1 + $0x10] sm:$0xff pattern:$0x73625140]  ;;  %v139_v60 = vpack.c.bf16 %v62_v54, %v62_v54  ;;  %v4233_v54 = vld [vmem:[#allocation3 + $0x418] sm:$0xff] }
  0x33   :  { %2541 = vmatpush.bf16.msrb.mxu1 %v4146_v57  ;;  %v65_v57 = vld.sshfl [vmem:[#allocation1 + $0x18] sm:$0xff pattern:$0x73625140]  ;;  %v141_v61 = vpack.c.bf16 %v64_v55, %v64_v55  ;;  %v4241_v55 = vld [vmem:[#allocation3 + $0x458] sm:$0xff] }
  0x34   :  { %2554 = vmatpush.bf16.msrb.mxu2 %v4154_v62  ;;  %v4204_v62 = vld [vmem:[#allocation3 + $0x330] sm:$0xff] }
  0x35   :  { %2567 = vmatpush.bf16.msrb.mxu3 %v4162_v63  ;;  %v140_v63 = vpack.c.bf16 %v63_v56, %v63_v56  ;;  %v4249_v56 = vld [vmem:[#allocation3 + $0x498] sm:$0xff] }
  0x36   :  { %2529 = vmatpush.bf16.msrb.mxu0 %v4137_v0  ;;  %v142_v0 = vpack.c.bf16 %v65_v57, %v65_v57  ;;  %v4257_v57 = vld [vmem:[#allocation3 + $0x4d8] sm:$0xff] }
  0x37   :  { %2542 = vmatpush.bf16.msrb.mxu1 %v4145_v1  ;;  %v4212_v1 = vld [vmem:[#allocation3 + $0x370] sm:$0xff] }
  0x38   :  { %2555 = vmatpush.bf16.msrb.mxu2 %v4153_v2  ;;  %v4220_v2 = vld [vmem:[#allocation3 + $0x3b0] sm:$0xff] }
  0x39   :  { %2568 = vmatpush.bf16.msrb.mxu3 %v4161_v3  ;;  %v4465_v3 = vld.sshfl [vmem:[#allocation1 + $0x20] sm:$0xff pattern:$0x73625140] }
  0x3a   :  { %2530 = vmatpush.bf16.msrb.mxu0 %v4136_v4  ;;  %v4467_v4 = vld.sshfl [vmem:[#allocation1 + $0x30] sm:$0xff pattern:$0x73625140] }
  0x3b   :  { %2543 = vmatpush.bf16.msrb.mxu1 %v4144_v5  ;;  %v4469_v5 = vld.sshfl [vmem:[#allocation1 + $0x28] sm:$0xff pattern:$0x73625140] }
  0x3c   :  { %2556 = vmatpush.bf16.msrb.mxu2 %v4152_v6  ;;  %v4228_v6 = vld [vmem:[#allocation3 + $0x3f0] sm:$0xff] }
  0x3d   :  { %2569 = vmatpush.bf16.msrb.mxu3 %v4160_v7  ;;  %v36_v7 = vld [vmem:[%s4511_s0 + $0x28] sm:$0xff] }
  0x3e   :  { %2531 = vmatpush.bf16.msrb.mxu0 %v4135_v8  ;;  %v4474_v8 = vld.sshfl [vmem:[#allocation1 + $0x38] sm:$0xff pattern:$0x73625140] }
  0x3f   :  { %2544 = vmatpush.bf16.msrb.mxu1 %v4143_v9  ;;  %71 = vst [vmem:[#allocation1 + $0x20] ss:$4 sm:$0xff] %v36_v7  ;;  %v4203_v9 = vld [vmem:[#allocation3 + $0x328] sm:$0xff]  ;;  %v4277_v7 = vld [vmem:[#allocation3 + $0x578] sm:$0xff] }
  0x40   :  { %2557 = vmatpush.bf16.msrb.mxu2 %v4151_v10  ;;  %v4211_v10 = vld [vmem:[#allocation3 + $0x368] sm:$0xff] }
  0x41   :  { %2570 = vmatpush.bf16.msrb.mxu3 %v4159_v11  ;;  %v4219_v11 = vld [vmem:[#allocation3 + $0x3a8] sm:$0xff] }
  0x42   :  { %2532 = vmatpush.bf16.msrb.mxu0 %v4134_v12  ;;  %v4227_v12 = vld [vmem:[#allocation3 + $0x3e8] sm:$0xff] }
  0x43   :  { %2545 = vmatpush.bf16.msrb.mxu1 %v4142_v13  ;;  %v4202_v13 = vld [vmem:[#allocation3 + $0x320] sm:$0xff] }
  0x44   :  { %2558 = vmatpush.bf16.msrb.mxu2 %v4150_v14  ;;  %v4210_v14 = vld [vmem:[#allocation3 + $0x360] sm:$0xff] }
  0x45   :  { %2571 = vmatpush.bf16.msrb.mxu3 %v4158_v15  ;;  %2533 = vmatmul.bf16.vlgmr.msrb.gmra.mxu0 %v135_v21  ;;  %v4218_v15 = vld [vmem:[#allocation3 + $0x3a0] sm:$0xff]  ;;  %v4200_v21 = vld [vmem:[#allocation3 + $0x310] sm:$0xff] }
  0x46   :  { %2577 = vmatpush.bf16.msra.mxu0 %v4173_v16  ;;  %2546 = vmatmul.bf16.vlgmr.msrb.gmra.mxu1 %v136_v23  ;;  %v4226_v16 = vld [vmem:[#allocation3 + $0x3e0] sm:$0xff]  ;;  %v4216_v23 = vld [vmem:[#allocation3 + $0x390] sm:$0xff] }
  0x47   :  { %2590 = vmatpush.bf16.msra.mxu1 %v4181_v17  ;;  %2559 = vmatmul.bf16.vlgmr.msrb.gmra.mxu2 %v137_v20  ;;  %v4201_v17 = vld [vmem:[#allocation3 + $0x318] sm:$0xff] }
  0x48   :  { %2603 = vmatpush.bf16.msra.mxu2 %v4189_v18  ;;  %2572 = vmatmul.bf16.vlgmr.msrb.gmra.mxu3 %v138_v22  ;;  %v4209_v18 = vld [vmem:[#allocation3 + $0x358] sm:$0xff]  ;;  %v4208_v22 = vld [vmem:[#allocation3 + $0x350] sm:$0xff] }
  0x49   :  { %2616 = vmatpush.bf16.msra.mxu3 %v4197_v19  ;;  %v4217_v19 = vld [vmem:[#allocation3 + $0x398] sm:$0xff] }
  0x4a   :  { %2578 = vmatpush.bf16.msra.mxu0 %v4172_v24  ;;  %v4225_v20 = vld [vmem:[#allocation3 + $0x3d8] sm:$0xff]  ;;  %v4224_v24 = vld [vmem:[#allocation3 + $0x3d0] sm:$0xff] }
  0x4b   :  { %2591 = vmatpush.bf16.msra.mxu1 %v4180_v25  ;;  %v4199_v25 = vld [vmem:[#allocation3 + $0x308] sm:$0xff] }
  0x4c   :  { %2604 = vmatpush.bf16.msra.mxu2 %v4188_v26  ;;  %v4207_v26 = vld [vmem:[#allocation3 + $0x348] sm:$0xff] }
  0x4d   :  { %2617 = vmatpush.bf16.msra.mxu3 %v4196_v27  ;;  %v35_v27 = vld [vmem:[%s4511_s0 + $0x20] sm:$0xff] }
  0x4e   :  { %2579 = vmatpush.bf16.msra.mxu0 %v4171_v28  ;;  %v4215_v28 = vld [vmem:[#allocation3 + $0x388] sm:$0xff]  ;;  %70 = vst [vmem:[#allocation1] ss:$4 sm:$0xff] %v35_v27 }
  0x4f   :  { %2592 = vmatpush.bf16.msra.mxu1 %v4179_v29  ;;  %v4223_v29 = vld [vmem:[#allocation3 + $0x3c8] sm:$0xff] }
  0x50   :  { %2605 = vmatpush.bf16.msra.mxu2 %v4187_v30  ;;  %v4198_v30 = vld [vmem:[#allocation3 + $0x300] sm:$0xff] }
  0x51   :  { %2618 = vmatpush.bf16.msra.mxu3 %v4195_v31  ;;  %v4206_v31 = vld [vmem:[#allocation3 + $0x340] sm:$0xff] }
  0x52   :  { %2580 = vmatpush.bf16.msra.mxu0 %v4170_v32  ;;  %v4214_v32 = vld [vmem:[#allocation3 + $0x380] sm:$0xff] }
  0x53   :  { %2593 = vmatpush.bf16.msra.mxu1 %v4178_v33  ;;  %v4222_v33 = vld [vmem:[#allocation3 + $0x3c0] sm:$0xff] }
  0x54   :  { %2606 = vmatpush.bf16.msra.mxu2 %v4186_v34  ;;  %v4237_v34 = vld [vmem:[#allocation3 + $0x438] sm:$0xff] }
  0x55   :  { %2619 = vmatpush.bf16.msra.mxu3 %v4194_v35  ;;  %v4245_v35 = vld [vmem:[#allocation3 + $0x478] sm:$0xff] }
  0x56   :  { %2581 = vmatpush.bf16.msra.mxu0 %v4169_v36  ;;  %v4253_v36 = vld [vmem:[#allocation3 + $0x4b8] sm:$0xff] }
  0x57   :  { %2594 = vmatpush.bf16.msra.mxu1 %v4177_v37  ;;  %v4261_v37 = vld [vmem:[#allocation3 + $0x4f8] sm:$0xff] }
  0x58   :  { %2607 = vmatpush.bf16.msra.mxu2 %v4185_v38  ;;  %v143_v38 = vpack.c.bf16 %v4465_v3, %v4465_v3  ;;  %v4238_v3 = vld [vmem:[#allocation3 + $0x440] sm:$0xff] }
  0x59   :  { %2620 = vmatpush.bf16.msra.mxu3 %v4193_v39  ;;  %v145_v39 = vpack.c.bf16 %v4467_v4, %v4467_v4  ;;  %v4246_v4 = vld [vmem:[#allocation3 + $0x480] sm:$0xff] }
  0x5a   :  { %2582 = vmatpush.bf16.msra.mxu0 %v4168_v40  ;;  %v144_v40 = vpack.c.bf16 %v4469_v5, %v4469_v5  ;;  %v4254_v5 = vld [vmem:[#allocation3 + $0x4c0] sm:$0xff] }
  0x5b   :  { %2595 = vmatpush.bf16.msra.mxu1 %v4176_v41  ;;  %v146_v41 = vpack.c.bf16 %v4474_v8, %v4474_v8  ;;  %v72_v8 = vld.sshfl [vmem:[#allocation1] sm:$0xff pattern:$0x73625140] }
  0x5c   :  { %2608 = vmatpush.bf16.msra.mxu2 %v4184_v42  ;;  %v4236_v42 = vld [vmem:[#allocation3 + $0x430] sm:$0xff] }
  0x5d   :  { %2621 = vmatpush.bf16.msra.mxu3 %v4192_v43  ;;  %v4244_v43 = vld [vmem:[#allocation3 + $0x470] sm:$0xff] }
  0x5e   :  { %2583 = vmatpush.bf16.msra.mxu0 %v4167_v44  ;;  %v4252_v44 = vld [vmem:[#allocation3 + $0x4b0] sm:$0xff] }
  0x5f   :  { %2596 = vmatpush.bf16.msra.mxu1 %v4175_v45  ;;  %v4260_v45 = vld [vmem:[#allocation3 + $0x4f0] sm:$0xff] }
  0x60   :  { %2609 = vmatpush.bf16.msra.mxu2 %v4183_v46  ;;  %v4235_v46 = vld [vmem:[#allocation3 + $0x428] sm:$0xff] }
  0x61   :  { %2622 = vmatpush.bf16.msra.mxu3 %v4191_v47  ;;  %v4243_v47 = vld [vmem:[#allocation3 + $0x468] sm:$0xff] }
  0x62   :  { %2584 = vmatpush.bf16.msra.mxu0 %v4166_v48  ;;  %v4251_v48 = vld [vmem:[#allocation3 + $0x4a8] sm:$0xff] }
  0x63   :  { %2597 = vmatpush.bf16.msra.mxu1 %v4174_v49  ;;  %v4259_v49 = vld [vmem:[#allocation3 + $0x4e8] sm:$0xff] }
  0x64   :  { %2610 = vmatpush.bf16.msra.mxu2 %v4182_v50  ;;  %v4234_v50 = vld [vmem:[#allocation3 + $0x420] sm:$0xff] }
  0x65   :  { %2623 = vmatpush.bf16.msra.mxu3 %v4190_v51  ;;  %2585 = vmatmul.bf16.vlgmr.msra.gmra.mxu0 %v139_v60  ;;  %v4242_v51 = vld [vmem:[#allocation3 + $0x460] sm:$0xff]  ;;  %v4248_v60 = vld [vmem:[#allocation3 + $0x490] sm:$0xff] }
  0x66   :  { %2629 = vmatpush.bf16.msrb.mxu0 %v4205_v52  ;;  %2598 = vmatmul.bf16.vlgmr.msra.gmra.mxu1 %v140_v63  ;;  %v4250_v52 = vld [vmem:[#allocation3 + $0x4a0] sm:$0xff]  ;;  %v4239_v63 = vld [vmem:[#allocation3 + $0x448] sm:$0xff] }
  0x67   :  { %2642 = vmatpush.bf16.msrb.mxu1 %v4213_v53  ;;  %2611 = vmatmul.bf16.vlgmr.msra.gmra.mxu2 %v141_v61  ;;  %v4258_v53 = vld [vmem:[#allocation3 + $0x4e0] sm:$0xff]  ;;  %v4256_v61 = vld [vmem:[#allocation3 + $0x4d0] sm:$0xff] }
  0x68   :  { %2655 = vmatpush.bf16.msrb.mxu2 %v4221_v58  ;;  %2624 = vmatmul.bf16.vlgmr.msra.gmra.mxu3 %v142_v0  ;;  %v4232_v58 = vld [vmem:[#allocation3 + $0x410] sm:$0xff]  ;;  %v4247_v0 = vld [vmem:[#allocation3 + $0x488] sm:$0xff] }
  0x69   :  { %2668 = vmatpush.bf16.msrb.mxu3 %v4229_v59  ;;  %v4240_v59 = vld [vmem:[#allocation3 + $0x450] sm:$0xff] }
  0x6a   :  { %2630 = vmatpush.bf16.msrb.mxu0 %v4204_v62  ;;  %v4231_v62 = vld [vmem:[#allocation3 + $0x408] sm:$0xff] }
  0x6b   :  { %2643 = vmatpush.bf16.msrb.mxu1 %v4212_v1  ;;  %v4255_v1 = vld [vmem:[#allocation3 + $0x4c8] sm:$0xff] }
  0x6c   :  { %2656 = vmatpush.bf16.msrb.mxu2 %v4220_v2  ;;  %v4230_v2 = vld [vmem:[#allocation3 + $0x400] sm:$0xff] }
  0x6d   :  { %2669 = vmatpush.bf16.msrb.mxu3 %v4228_v6  ;;  %v4269_v6 = vld [vmem:[#allocation3 + $0x538] sm:$0xff] }
  0x6e   :  { %2631 = vmatpush.bf16.msrb.mxu0 %v4203_v9  ;;  %v74_v9 = vld.sshfl [vmem:[#allocation1 + $0x10] sm:$0xff pattern:$0x73625140] }
  0x6f   :  { %2644 = vmatpush.bf16.msrb.mxu1 %v4211_v10  ;;  %v73_v10 = vld.sshfl [vmem:[#allocation1 + $0x8] sm:$0xff pattern:$0x73625140] }
  0x70   :  { %2657 = vmatpush.bf16.msrb.mxu2 %v4219_v11  ;;  %v75_v11 = vld.sshfl [vmem:[#allocation1 + $0x18] sm:$0xff pattern:$0x73625140] }
  0x71   :  { %2670 = vmatpush.bf16.msrb.mxu3 %v4227_v12  ;;  %v4285_v12 = vld [vmem:[#allocation3 + $0x5b8] sm:$0xff] }
  0x72   :  { %2632 = vmatpush.bf16.msrb.mxu0 %v4202_v13  ;;  %v4293_v13 = vld [vmem:[#allocation3 + $0x5f8] sm:$0xff] }
  0x73   :  { %2645 = vmatpush.bf16.msrb.mxu1 %v4210_v14  ;;  %v147_v14 = vpack.c.bf16 %v72_v8, %v72_v8  ;;  %v4300_v8 = vld [vmem:[#allocation3 + $0x630] sm:$0xff] }
  0x74   :  { %2658 = vmatpush.bf16.msrb.mxu2 %v4218_v15  ;;  %v149_v15 = vpack.c.bf16 %v74_v9, %v74_v9  ;;  %v4308_v9 = vld [vmem:[#allocation3 + $0x670] sm:$0xff] }
  0x75   :  { %2671 = vmatpush.bf16.msrb.mxu3 %v4226_v16  ;;  %v148_v16 = vpack.c.bf16 %v73_v10, %v73_v10  ;;  %v4316_v10 = vld [vmem:[#allocation3 + $0x6b0] sm:$0xff] }
  0x76   :  { %2633 = vmatpush.bf16.msrb.mxu0 %v4201_v17  ;;  %v150_v17 = vpack.c.bf16 %v75_v11, %v75_v11  ;;  %v4324_v11 = vld [vmem:[#allocation3 + $0x6f0] sm:$0xff] }
  0x77   :  { %2646 = vmatpush.bf16.msrb.mxu1 %v4209_v18  ;;  %v4268_v18 = vld [vmem:[#allocation3 + $0x530] sm:$0xff] }
  0x78   :  { %2659 = vmatpush.bf16.msrb.mxu2 %v4217_v19  ;;  %v4276_v19 = vld [vmem:[#allocation3 + $0x570] sm:$0xff] }
  0x79   :  { %2672 = vmatpush.bf16.msrb.mxu3 %v4225_v20  ;;  %v4284_v20 = vld [vmem:[#allocation3 + $0x5b0] sm:$0xff] }
  0x7a   :  { %2634 = vmatpush.bf16.msrb.mxu0 %v4200_v21  ;;  %v4292_v21 = vld [vmem:[#allocation3 + $0x5f0] sm:$0xff] }
  0x7b   :  { %2647 = vmatpush.bf16.msrb.mxu1 %v4208_v22  ;;  %v4267_v22 = vld [vmem:[#allocation3 + $0x528] sm:$0xff] }
  0x7c   :  { %2660 = vmatpush.bf16.msrb.mxu2 %v4216_v23  ;;  %v4275_v23 = vld [vmem:[#allocation3 + $0x568] sm:$0xff] }
  0x7d   :  { %2673 = vmatpush.bf16.msrb.mxu3 %v4224_v24  ;;  %v4283_v24 = vld [vmem:[#allocation3 + $0x5a8] sm:$0xff] }
  0x7e   :  { %2635 = vmatpush.bf16.msrb.mxu0 %v4199_v25  ;;  %v4291_v25 = vld [vmem:[#allocation3 + $0x5e8] sm:$0xff] }
  0x7f   :  { %2648 = vmatpush.bf16.msrb.mxu1 %v4207_v26  ;;  %v744_v26 = vstv %s4513_s2 }
  0x80   :  { %2661 = vmatpush.bf16.msrb.mxu2 %v4215_v28  ;;  %v4266_v28 = vld [vmem:[#allocation3 + $0x520] sm:$0xff] }
  0x81   :  { %2674 = vmatpush.bf16.msrb.mxu3 %v4223_v29  ;;  %v4274_v29 = vld [vmem:[#allocation3 + $0x560] sm:$0xff] }
  0x82   :  { %2636 = vmatpush.bf16.msrb.mxu0 %v4198_v30 }
  0x83   :  { %2649 = vmatpush.bf16.msrb.mxu1 %v4206_v31 }
  0x84   :  { %2662 = vmatpush.bf16.msrb.mxu2 %v4214_v32  ;;  %v4282_v32 = vld [vmem:[#allocation3 + $0x5a0] sm:$0xff] }
  0x85   :  { %2675 = vmatpush.bf16.msrb.mxu3 %v4222_v33  ;;  %2637 = vmatmul.bf16.vlgmr.msrb.gmra.mxu0 %v143_v38  ;;  %v4290_v33 = vld [vmem:[#allocation3 + $0x5e0] sm:$0xff]  ;;  %v4289_v38 = vld [vmem:[#allocation3 + $0x5d8] sm:$0xff] }
  0x86   :  { %2681 = vmatpush.bf16.msra.mxu0 %v4237_v34  ;;  %2650 = vmatmul.bf16.vlgmr.msrb.gmra.mxu1 %v144_v40 }
  0x87   :  { %2694 = vmatpush.bf16.msra.mxu1 %v4245_v35  ;;  %2663 = vmatmul.bf16.vlgmr.msrb.gmra.mxu2 %v145_v39  ;;  %v4265_v35 = vld [vmem:[#allocation3 + $0x518] sm:$0xff] }
  0x88   :  { %2707 = vmatpush.bf16.msra.mxu2 %v4253_v36  ;;  %2676 = vmatmul.bf16.vlgmr.msrb.gmra.mxu3 %v146_v41  ;;  %v4273_v36 = vld [vmem:[#allocation3 + $0x558] sm:$0xff] }
  0x89   :  { %2720 = vmatpush.bf16.msra.mxu3 %v4261_v37  ;;  %v4281_v37 = vld [vmem:[#allocation3 + $0x598] sm:$0xff] }
  0x8a   :  { %2682 = vmatpush.bf16.msra.mxu0 %v4236_v42 }
  0x8b   :  { %2695 = vmatpush.bf16.msra.mxu1 %v4244_v43  ;;  %v4264_v43 = vld [vmem:[#allocation3 + $0x510] sm:$0xff] }
  0x8c   :  { %2708 = vmatpush.bf16.msra.mxu2 %v4252_v44  ;;  %v4272_v44 = vld [vmem:[#allocation3 + $0x550] sm:$0xff] }
  0x8d   :  { %2721 = vmatpush.bf16.msra.mxu3 %v4260_v45 }
  0x8e   :  { %2683 = vmatpush.bf16.msra.mxu0 %v4235_v46 }
  0x8f   :  { %2696 = vmatpush.bf16.msra.mxu1 %v4243_v47  ;;  %v4280_v47 = vld [vmem:[#allocation3 + $0x590] sm:$0xff] }
  0x90   :  { %2709 = vmatpush.bf16.msra.mxu2 %v4251_v48  ;;  %v4288_v48 = vld [vmem:[#allocation3 + $0x5d0] sm:$0xff] }
  0x91   :  { %2722 = vmatpush.bf16.msra.mxu3 %v4259_v49  ;;  %v4263_v49 = vld [vmem:[#allocation3 + $0x508] sm:$0xff] }
  0x92   :  { %2684 = vmatpush.bf16.msra.mxu0 %v4234_v50  ;;  %v4271_v50 = vld [vmem:[#allocation3 + $0x548] sm:$0xff] }
  0x93   :  { %2697 = vmatpush.bf16.msra.mxu1 %v4242_v51  ;;  %v37_v51 = vld [vmem:[%s4511_s0 + $0x30] sm:$0xff] }
  0x94   :  { %2710 = vmatpush.bf16.msra.mxu2 %v4250_v52  ;;  %v4279_v52 = vld [vmem:[#allocation3 + $0x588] sm:$0xff]  ;;  %80 = vst [vmem:[#allocation1] ss:$4 sm:$0xff] %v37_v51 }
  0x95   :  { %2723 = vmatpush.bf16.msra.mxu3 %v4258_v53  ;;  %v4287_v53 = vld [vmem:[#allocation3 + $0x5c8] sm:$0xff] }
  0x96   :  { %2685 = vmatpush.bf16.msra.mxu0 %v4233_v54 }
  0x97   :  { %2698 = vmatpush.bf16.msra.mxu1 %v4241_v55 }
  0x98   :  { %2711 = vmatpush.bf16.msra.mxu2 %v4249_v56  ;;  %v4262_v56 = vld [vmem:[#allocation3 + $0x500] sm:$0xff] }
  0x99   :  { %2724 = vmatpush.bf16.msra.mxu3 %v4257_v57  ;;  %v4270_v57 = vld [vmem:[#allocation3 + $0x540] sm:$0xff] }
  0x9a   :  { %2686 = vmatpush.bf16.msra.mxu0 %v4232_v58  ;;  %v4278_v58 = vld [vmem:[#allocation3 + $0x580] sm:$0xff] }
  0x9b   :  { %2699 = vmatpush.bf16.msra.mxu1 %v4240_v59  ;;  %v4286_v59 = vld [vmem:[#allocation3 + $0x5c0] sm:$0xff]  ;;  %v82_v51 = vld.sshfl [vmem:[#allocation1] sm:$0xff pattern:$0x73625140] }
  0x9c   :  { %2712 = vmatpush.bf16.msra.mxu2 %v4248_v60  ;;  %v4301_v60 = vld [vmem:[#allocation3 + $0x638] sm:$0xff] }
  0x9d   :  { %2725 = vmatpush.bf16.msra.mxu3 %v4256_v61  ;;  %v4309_v61 = vld [vmem:[#allocation3 + $0x678] sm:$0xff] }
  0x9e   :  { %2687 = vmatpush.bf16.msra.mxu0 %v4231_v62  ;;  %v76_v62 = vld.sshfl [vmem:[#allocation1 + $0x20] sm:$0xff pattern:$0x73625140] }
  0x9f   :  { %2700 = vmatpush.bf16.msra.mxu1 %v4239_v63  ;;  %v78_v63 = vld.sshfl [vmem:[#allocation1 + $0x30] sm:$0xff pattern:$0x73625140] }
  0xa0   :  { %2713 = vmatpush.bf16.msra.mxu2 %v4247_v0  ;;  %v77_v0 = vld.sshfl [vmem:[#allocation1 + $0x28] sm:$0xff pattern:$0x73625140] }
  0xa1   :  { %2726 = vmatpush.bf16.msra.mxu3 %v4255_v1  ;;  %v79_v1 = vld.sshfl [vmem:[#allocation1 + $0x38] sm:$0xff pattern:$0x73625140] }
  0xa2   :  { %2688 = vmatpush.bf16.msra.mxu0 %v4230_v2  ;;  %v2482_v27 = vpop.f32.mrf.mxu0  ;;  %v4317_v2 = vld [vmem:[#allocation3 + $0x6b8] sm:$0xff] }
  0xa3   :  { %2701 = vmatpush.bf16.msra.mxu1 %v4238_v3  ;;  %v2483_v30 = vadd.f32 %v2482_v27, %v744_v26  ;;  %v2495_v31 = vpop.f32.mrf.mxu1  ;;  %v4325_v3 = vld [vmem:[#allocation3 + $0x6f8] sm:$0xff] }
  0xa4   :  { %2714 = vmatpush.bf16.msra.mxu2 %v4246_v4  ;;  %v151_v4 = vpack.c.bf16 %v76_v62, %v76_v62  ;;  %v4313_v26 = vld [vmem:[#allocation3 + $0x698] sm:$0xff]  ;;  %v4340_v62 = vld [vmem:[#allocation3 + $0x770] sm:$0xff] }
  0xa5   :  { %2727 = vmatpush.bf16.msra.mxu3 %v4254_v5  ;;  %2689 = vmatmul.bf16.vlgmr.msra.gmra.mxu0 %v147_v14  ;;  %v2496_v34 = vadd.f32 %v2495_v31, %v2483_v30  ;;  %v153_v5 = vpack.c.bf16 %v78_v63, %v78_v63  ;;  %v4315_v14 = vld [vmem:[#allocation3 + $0x6a8] sm:$0xff]  ;;  %v4321_v27 = vld [vmem:[#allocation3 + $0x6d8] sm:$0xff]  ;;  %v4348_v63 = vld [vmem:[#allocation3 + $0x7b0] sm:$0xff] }
  0xa6   :  { %2733 = vmatpush.bf16.msrb.mxu0 %v4269_v6  ;;  %2702 = vmatmul.bf16.vlgmr.msra.gmra.mxu1 %v148_v16  ;;  %v152_v6 = vpack.c.bf16 %v77_v0, %v77_v0  ;;  %v4356_v0 = vld [vmem:[#allocation3 + $0x7f0] sm:$0xff] }
  0xa7   :  { %2746 = vmatpush.bf16.msrb.mxu1 %v4277_v7  ;;  %2715 = vmatmul.bf16.vlgmr.msra.gmra.mxu2 %v149_v15  ;;  %v154_v7 = vpack.c.bf16 %v79_v1, %v79_v1  ;;  %v4323_v15 = vld [vmem:[#allocation3 + $0x6e8] sm:$0xff] }
  0xa8   :  { %2759 = vmatpush.bf16.msrb.mxu2 %v4285_v12  ;;  %2728 = vmatmul.bf16.vlgmr.msra.gmra.mxu3 %v150_v17  ;;  %v4299_v12 = vld [vmem:[#allocation3 + $0x628] sm:$0xff]  ;;  %v4298_v17 = vld [vmem:[#allocation3 + $0x620] sm:$0xff] }
  0xa9   :  { %2772 = vmatpush.bf16.msrb.mxu3 %v4293_v13  ;;  %v4307_v13 = vld [vmem:[#allocation3 + $0x668] sm:$0xff] }
  0xaa   :  { %2734 = vmatpush.bf16.msrb.mxu0 %v4268_v18  ;;  %v2508_v39 = vpop.f32.mrf.mxu2  ;;  %v2484_v42 = vpop.f32.mrf.mxu0  ;;  %v4306_v18 = vld [vmem:[#allocation3 + $0x660] sm:$0xff]  ;;  %v4331_v1 = vld [vmem:[#allocation3 + $0x728] sm:$0xff] }
  0xab   :  { %2747 = vmatpush.bf16.msrb.mxu1 %v4276_v19  ;;  %v2509_v40 = vadd.f32 %v2508_v39, %v2496_v34  ;;  %v2521_v41 = vpop.f32.mrf.mxu3  ;;  %v2497_v46 = vpop.f32.mrf.mxu1  ;;  %v4303_v39 = vld [vmem:[#allocation3 + $0x648] sm:$0xff] }
  0xac   :  { %2760 = vmatpush.bf16.msrb.mxu2 %v4284_v20  ;;  %v4319_v42 = vld [vmem:[#allocation3 + $0x6c8] sm:$0xff]  ;;  %v4302_v46 = vld [vmem:[#allocation3 + $0x640] sm:$0xff] }
  0xad   :  { %2773 = vmatpush.bf16.msrb.mxu3 %v4292_v21  ;;  %v4490_v45 = vadd.f32 %v2521_v41, %v2509_v40  ;;  %v4314_v21 = vld [vmem:[#allocation3 + $0x6a0] sm:$0xff]  ;;  %v38_v40 = vld [vmem:[%s4511_s0 + $0x38] sm:$0xff]  ;;  %v4311_v41 = vld [vmem:[#allocation3 + $0x688] sm:$0xff] }
  0xae   :  { %2735 = vmatpush.bf16.msrb.mxu0 %v4267_v22  ;;  %v4322_v22 = vld [vmem:[#allocation3 + $0x6e0] sm:$0xff]  ;;  %81 = vst [vmem:[#allocation1 + $0x20] ss:$4 sm:$0xff] %v38_v40 }
  0xaf   :  { %2748 = vmatpush.bf16.msrb.mxu1 %v4275_v23 }
  0xb0   :  { %2761 = vmatpush.bf16.msrb.mxu2 %v4283_v24  ;;  %v4297_v24 = vld [vmem:[#allocation3 + $0x618] sm:$0xff] }
  0xb1   :  { %2774 = vmatpush.bf16.msrb.mxu3 %v4291_v25  ;;  %v4305_v25 = vld [vmem:[#allocation3 + $0x658] sm:$0xff] }
  0xb2   :  { %2736 = vmatpush.bf16.msrb.mxu0 %v4266_v28  ;;  %v2510_v54 = vpop.f32.mrf.mxu2 }
  0xb3   :  { %2749 = vmatpush.bf16.msrb.mxu1 %v4274_v29  ;;  %v2523_v55 = vpop.f32.mrf.mxu3  ;;  %v85_v54 = vld.sshfl [vmem:[#allocation1 + $0x18] sm:$0xff pattern:$0x73625140] }
  0xb4   :  { %2762 = vmatpush.bf16.msrb.mxu2 %v4282_v32  ;;  %v4296_v32 = vld [vmem:[#allocation3 + $0x610] sm:$0xff]  ;;  %v4349_v55 = vld [vmem:[#allocation3 + $0x7b8] sm:$0xff] }
  0xb5   :  { %2775 = vmatpush.bf16.msrb.mxu3 %v4290_v33  ;;  %v4304_v33 = vld [vmem:[#allocation3 + $0x650] sm:$0xff]  ;;  %v86_v40 = vld.sshfl [vmem:[#allocation1 + $0x20] sm:$0xff pattern:$0x73625140] }
  0xb6   :  { %2737 = vmatpush.bf16.msrb.mxu0 %v4265_v35 }
  0xb7   :  { %2750 = vmatpush.bf16.msrb.mxu1 %v4273_v36  ;;  %v4312_v36 = vld [vmem:[#allocation3 + $0x690] sm:$0xff] }
  0xb8   :  { %2763 = vmatpush.bf16.msrb.mxu2 %v4281_v37  ;;  %v4320_v37 = vld [vmem:[#allocation3 + $0x6d0] sm:$0xff] }
  0xb9   :  { %2776 = vmatpush.bf16.msrb.mxu3 %v4289_v38  ;;  %v4295_v38 = vld [vmem:[#allocation3 + $0x608] sm:$0xff] }
  0xba   :  { %2738 = vmatpush.bf16.msrb.mxu0 %v4264_v43 }
  0xbb   :  { %2751 = vmatpush.bf16.msrb.mxu1 %v4272_v44 }
  0xbc   :  { %2764 = vmatpush.bf16.msrb.mxu2 %v4280_v47  ;;  %v4310_v47 = vld [vmem:[#allocation3 + $0x680] sm:$0xff] }
  0xbd   :  { %2777 = vmatpush.bf16.msrb.mxu3 %v4288_v48  ;;  %v4318_v48 = vld [vmem:[#allocation3 + $0x6c0] sm:$0xff] }
  0xbe   :  { %2739 = vmatpush.bf16.msrb.mxu0 %v4263_v49  ;;  %v4333_v49 = vld [vmem:[#allocation3 + $0x738] sm:$0xff] }
  0xbf   :  { %2752 = vmatpush.bf16.msrb.mxu1 %v4271_v50  ;;  %v4341_v50 = vld [vmem:[#allocation3 + $0x778] sm:$0xff] }
  0xc0   :  { %2765 = vmatpush.bf16.msrb.mxu2 %v4279_v52  ;;  %v84_v52 = vld.sshfl [vmem:[#allocation1 + $0x10] sm:$0xff pattern:$0x73625140] }
  0xc1   :  { %2778 = vmatpush.bf16.msrb.mxu3 %v4287_v53  ;;  %v83_v53 = vld.sshfl [vmem:[#allocation1 + $0x8] sm:$0xff pattern:$0x73625140] }
  0xc2   :  { %2740 = vmatpush.bf16.msrb.mxu0 %v4262_v56  ;;  %v2534_v16 = vpop.f32.mrf.mxu0  ;;  %v4357_v56 = vld [vmem:[#allocation3 + $0x7f8] sm:$0xff] }
  0xc3   :  { %2753 = vmatpush.bf16.msrb.mxu1 %v4270_v57  ;;  %v2535_v19 = vadd.f32 %v2534_v16, %v4490_v45  ;;  %v2547_v20 = vpop.f32.mrf.mxu1  ;;  %v4294_v45 = vld [vmem:[#allocation3 + $0x600] sm:$0xff]  ;;  %v155_v57 = vpack.c.bf16 %v82_v51, %v82_v51  ;;  %v4353_v16 = vld [vmem:[#allocation3 + $0x7d8] sm:$0xff]  ;;  %v4372_v51 = vld [vmem:[#allocation3 + $0x870] sm:$0xff] }
  0xc4   :  { %2766 = vmatpush.bf16.msrb.mxu2 %v4278_v58  ;;  %v157_v58 = vpack.c.bf16 %v84_v52, %v84_v52  ;;  %v4380_v52 = vld [vmem:[#allocation3 + $0x8b0] sm:$0xff] }
  0xc5   :  { %2779 = vmatpush.bf16.msrb.mxu3 %v4286_v59  ;;  %2741 = vmatmul.bf16.vlgmr.msrb.gmra.mxu0 %v151_v4  ;;  %v2548_v23 = vadd.f32 %v2547_v20, %v2535_v19  ;;  %v156_v59 = vpack.c.bf16 %v83_v53, %v83_v53  ;;  %v4355_v4 = vld [vmem:[#allocation3 + $0x7e8] sm:$0xff]  ;;  %v4388_v53 = vld [vmem:[#allocation3 + $0x8f0] sm:$0xff] }
  0xc6   :  { %2785 = vmatpush.bf16.msra.mxu0 %v4301_v60  ;;  %2754 = vmatmul.bf16.vlgmr.msrb.gmra.mxu1 %v152_v6  ;;  %v158_v60 = vpack.c.bf16 %v85_v54, %v85_v54  ;;  %v4363_v54 = vld [vmem:[#allocation3 + $0x828] sm:$0xff] }
  0xc7   :  { %2798 = vmatpush.bf16.msra.mxu1 %v4309_v61  ;;  %2767 = vmatmul.bf16.vlgmr.msrb.gmra.mxu2 %v153_v5  ;;  %v4332_v61 = vld [vmem:[#allocation3 + $0x730] sm:$0xff] }
  0xc8   :  { %2811 = vmatpush.bf16.msra.mxu2 %v4317_v2  ;;  %2780 = vmatmul.bf16.vlgmr.msrb.gmra.mxu3 %v154_v7  ;;  %v4339_v2 = vld [vmem:[#allocation3 + $0x768] sm:$0xff]  ;;  %v4330_v7 = vld [vmem:[#allocation3 + $0x720] sm:$0xff] }
  0xc9   :  { %2824 = vmatpush.bf16.msra.mxu3 %v4325_v3  ;;  %v4347_v3 = vld [vmem:[#allocation3 + $0x7a8] sm:$0xff] }
  0xca   :  { %2786 = vmatpush.bf16.msra.mxu0 %v4300_v8  ;;  %v2560_v28 = vpop.f32.mrf.mxu2  ;;  %v2536_v31 = vpop.f32.mrf.mxu0  ;;  %v4338_v8 = vld [vmem:[#allocation3 + $0x760] sm:$0xff] }
  0xcb   :  { %2799 = vmatpush.bf16.msra.mxu1 %v4308_v9  ;;  %v2561_v29 = vadd.f32 %v2560_v28, %v2548_v23  ;;  %v2573_v30 = vpop.f32.mrf.mxu3  ;;  %v2549_v35 = vpop.f32.mrf.mxu1  ;;  %v4336_v23 = vld [vmem:[#allocation3 + $0x750] sm:$0xff]  ;;  %v4327_v28 = vld [vmem:[#allocation3 + $0x708] sm:$0xff] }
  0xcc   :  { %2812 = vmatpush.bf16.msra.mxu2 %v4316_v10  ;;  %v4346_v10 = vld [vmem:[#allocation3 + $0x7a0] sm:$0xff]  ;;  %v4351_v31 = vld [vmem:[#allocation3 + $0x7c8] sm:$0xff] }
  0xcd   :  { %2825 = vmatpush.bf16.msra.mxu3 %v4324_v11  ;;  %v4496_v34 = vadd.f32 %v2573_v30, %v2561_v29  ;;  %v4354_v11 = vld [vmem:[#allocation3 + $0x7e0] sm:$0xff]  ;;  %v4335_v29 = vld [vmem:[#allocation3 + $0x748] sm:$0xff] }
  0xce   :  { %2787 = vmatpush.bf16.msra.mxu0 %v4299_v12  ;;  %v4343_v30 = vld [vmem:[#allocation3 + $0x788] sm:$0xff]  ;;  %v4334_v35 = vld [vmem:[#allocation3 + $0x740] sm:$0xff] }
  0xcf   :  { %2800 = vmatpush.bf16.msra.mxu1 %v4307_v13  ;;  %v4329_v13 = vld [vmem:[#allocation3 + $0x718] sm:$0xff] }
  0xd0   :  { %2813 = vmatpush.bf16.msra.mxu2 %v4315_v14  ;;  %v4337_v14 = vld [vmem:[#allocation3 + $0x758] sm:$0xff] }
  0xd1   :  { %2826 = vmatpush.bf16.msra.mxu3 %v4323_v15  ;;  %v4345_v15 = vld [vmem:[#allocation3 + $0x798] sm:$0xff] }
  0xd2   :  { %2788 = vmatpush.bf16.msra.mxu0 %v4298_v17  ;;  %v2562_v43 = vpop.f32.mrf.mxu2 }
  0xd3   :  { %2801 = vmatpush.bf16.msra.mxu1 %v4306_v18  ;;  %v2575_v44 = vpop.f32.mrf.mxu3  ;;  %v89_v43 = vld.sshfl [vmem:[#allocation1 + $0x38] sm:$0xff pattern:$0x73625140] }
  0xd4   :  { %2814 = vmatpush.bf16.msra.mxu2 %v4314_v21  ;;  %v4381_v44 = vld [vmem:[#allocation3 + $0x8b8] sm:$0xff] }
  0xd5   :  { %2827 = vmatpush.bf16.msra.mxu3 %v4322_v22  ;;  %v4328_v22 = vld [vmem:[#allocation3 + $0x710] sm:$0xff] }
  0xd6   :  { %2789 = vmatpush.bf16.msra.mxu0 %v4297_v24 }
  0xd7   :  { %2802 = vmatpush.bf16.msra.mxu1 %v4305_v25  ;;  %v4344_v25 = vld [vmem:[#allocation3 + $0x790] sm:$0xff] }
  0xd8   :  { %2815 = vmatpush.bf16.msra.mxu2 %v4313_v26  ;;  %v4352_v26 = vld [vmem:[#allocation3 + $0x7d0] sm:$0xff] }
  0xd9   :  { %2828 = vmatpush.bf16.msra.mxu3 %v4321_v27  ;;  %v39_v27 = vld [vmem:[%s4511_s0 + $0x40] sm:$0xff] }
  0xda   :  { %2790 = vmatpush.bf16.msra.mxu0 %v4296_v32  ;;  %90 = vst [vmem:[#allocation1] ss:$4 sm:$0xff] %v39_v27 }
  0xdb   :  { %2803 = vmatpush.bf16.msra.mxu1 %v4304_v33 }
  0xdc   :  { %2816 = vmatpush.bf16.msra.mxu2 %v4312_v36  ;;  %v4342_v36 = vld [vmem:[#allocation3 + $0x780] sm:$0xff] }
  0xdd   :  { %2829 = vmatpush.bf16.msra.mxu3 %v4320_v37  ;;  %v4350_v37 = vld [vmem:[#allocation3 + $0x7c0] sm:$0xff] }
  0xde   :  { %2791 = vmatpush.bf16.msra.mxu0 %v4295_v38  ;;  %v4365_v38 = vld [vmem:[#allocation3 + $0x838] sm:$0xff] }
  0xdf   :  { %2804 = vmatpush.bf16.msra.mxu1 %v4303_v39  ;;  %v4373_v39 = vld [vmem:[#allocation3 + $0x878] sm:$0xff] }
  0xe0   :  { %2817 = vmatpush.bf16.msra.mxu2 %v4311_v41  ;;  %v88_v41 = vld.sshfl [vmem:[#allocation1 + $0x30] sm:$0xff pattern:$0x73625140] }
  0xe1   :  { %2830 = vmatpush.bf16.msra.mxu3 %v4319_v42  ;;  %v87_v42 = vld.sshfl [vmem:[#allocation1 + $0x28] sm:$0xff pattern:$0x73625140] }
  0xe2   :  { %2792 = vmatpush.bf16.msra.mxu0 %v4294_v45  ;;  %v2586_v5 = vpop.f32.mrf.mxu0  ;;  %v4389_v45 = vld [vmem:[#allocation3 + $0x8f8] sm:$0xff]  ;;  %v92_v27 = vld.sshfl [vmem:[#allocation1 + $0x8] sm:$0xff pattern:$0x73625140] }
  0xe3   :  { %2805 = vmatpush.bf16.msra.mxu1 %v4302_v46  ;;  %v2587_v6 = vadd.f32 %v2586_v5, %v4496_v34  ;;  %v2599_v9 = vpop.f32.mrf.mxu1  ;;  %v4326_v34 = vld [vmem:[#allocation3 + $0x700] sm:$0xff]  ;;  %v159_v46 = vpack.c.bf16 %v86_v40, %v86_v40  ;;  %v4385_v5 = vld [vmem:[#allocation3 + $0x8d8] sm:$0xff] }
  0xe4   :  { %2818 = vmatpush.bf16.msra.mxu2 %v4310_v47  ;;  %v161_v47 = vpack.c.bf16 %v88_v41, %v88_v41 }
  0xe5   :  { %2831 = vmatpush.bf16.msra.mxu3 %v4318_v48  ;;  %2793 = vmatmul.bf16.vlgmr.msra.gmra.mxu0 %v155_v57  ;;  %v2600_v12 = vadd.f32 %v2599_v9, %v2587_v6  ;;  %v160_v48 = vpack.c.bf16 %v87_v42, %v87_v42  ;;  %v4387_v57 = vld [vmem:[#allocation3 + $0x8e8] sm:$0xff] }
  0xe6   :  { %2837 = vmatpush.bf16.msrb.mxu0 %v4333_v49  ;;  %2806 = vmatmul.bf16.vlgmr.msra.gmra.mxu1 %v156_v59  ;;  %v162_v49 = vpack.c.bf16 %v89_v43, %v89_v43 }
  0xe7   :  { %2850 = vmatpush.bf16.msrb.mxu1 %v4341_v50  ;;  %2819 = vmatmul.bf16.vlgmr.msra.gmra.mxu2 %v157_v58  ;;  %v4364_v50 = vld [vmem:[#allocation3 + $0x830] sm:$0xff] }
  0xe8   :  { %2863 = vmatpush.bf16.msrb.mxu2 %v4349_v55  ;;  %2832 = vmatmul.bf16.vlgmr.msra.gmra.mxu3 %v158_v60  ;;  %v4371_v55 = vld [vmem:[#allocation3 + $0x868] sm:$0xff]  ;;  %v4362_v60 = vld [vmem:[#allocation3 + $0x820] sm:$0xff] }
  0xe9   :  { %2876 = vmatpush.bf16.msrb.mxu3 %v4357_v56  ;;  %v4379_v56 = vld [vmem:[#allocation3 + $0x8a8] sm:$0xff] }
  0xea   :  { %2838 = vmatpush.bf16.msrb.mxu0 %v4332_v61  ;;  %v2612_v17 = vpop.f32.mrf.mxu2  ;;  %v2588_v20 = vpop.f32.mrf.mxu0  ;;  %v4370_v61 = vld [vmem:[#allocation3 + $0x860] sm:$0xff] }
  0xeb   :  { %2851 = vmatpush.bf16.msrb.mxu1 %v4340_v62  ;;  %v2613_v18 = vadd.f32 %v2612_v17, %v2600_v12  ;;  %v2625_v19 = vpop.f32.mrf.mxu3  ;;  %v2601_v24 = vpop.f32.mrf.mxu1  ;;  %v4368_v12 = vld [vmem:[#allocation3 + $0x850] sm:$0xff]  ;;  %v4367_v17 = vld [vmem:[#allocation3 + $0x848] sm:$0xff] }
  0xec   :  { %2864 = vmatpush.bf16.msrb.mxu2 %v4348_v63  ;;  %v4378_v63 = vld [vmem:[#allocation3 + $0x8a0] sm:$0xff] }
  0xed   :  { %2877 = vmatpush.bf16.msrb.mxu3 %v4356_v0  ;;  %v4502_v21 = vadd.f32 %v2625_v19, %v2613_v18  ;;  %v4386_v0 = vld [vmem:[#allocation3 + $0x8e0] sm:$0xff]  ;;  %v4375_v18 = vld [vmem:[#allocation3 + $0x888] sm:$0xff] }
  0xee   :  { %2839 = vmatpush.bf16.msrb.mxu0 %v4331_v1  ;;  %v4383_v19 = vld [vmem:[#allocation3 + $0x8c8] sm:$0xff]  ;;  %v4374_v24 = vld [vmem:[#allocation3 + $0x880] sm:$0xff] }
  0xef   :  { %2852 = vmatpush.bf16.msrb.mxu1 %v4339_v2  ;;  %v4361_v2 = vld [vmem:[#allocation3 + $0x818] sm:$0xff] }
  0xf0   :  { %2865 = vmatpush.bf16.msrb.mxu2 %v4347_v3  ;;  %v4369_v3 = vld [vmem:[#allocation3 + $0x858] sm:$0xff] }
  0xf1   :  { %2878 = vmatpush.bf16.msrb.mxu3 %v4355_v4  ;;  %v4377_v4 = vld [vmem:[#allocation3 + $0x898] sm:$0xff] }
  0xf2   :  { %2840 = vmatpush.bf16.msrb.mxu0 %v4330_v7  ;;  %v2614_v32 = vpop.f32.mrf.mxu2 }
  0xf3   :  { %2853 = vmatpush.bf16.msrb.mxu1 %v4338_v8  ;;  %v2627_v33 = vpop.f32.mrf.mxu3 }
  0xf4   :  { %2866 = vmatpush.bf16.msrb.mxu2 %v4346_v10 }
  0xf5   :  { %2879 = vmatpush.bf16.msrb.mxu3 %v4354_v11  ;;  %v4360_v11 = vld [vmem:[#allocation3 + $0x810] sm:$0xff] }
  0xf6   :  { %2841 = vmatpush.bf16.msrb.mxu0 %v4329_v13 }
  0xf7   :  { %2854 = vmatpush.bf16.msrb.mxu1 %v4337_v14  ;;  %v4376_v14 = vld [vmem:[#allocation3 + $0x890] sm:$0xff] }
  0xf8   :  { %2867 = vmatpush.bf16.msrb.mxu2 %v4345_v15  ;;  %v4384_v15 = vld [vmem:[#allocation3 + $0x8d0] sm:$0xff] }
  0xf9   :  { %2880 = vmatpush.bf16.msrb.mxu3 %v4353_v16  ;;  %v4359_v16 = vld [vmem:[#allocation3 + $0x808] sm:$0xff] }
  0xfa   :  { %2842 = vmatpush.bf16.msrb.mxu0 %v4328_v22 }
  0xfb   :  { %2855 = vmatpush.bf16.msrb.mxu1 %v4336_v23  ;;  %v4366_v23 = vld [vmem:[#allocation3 + $0x840] sm:$0xff] }
  0xfc   :  { %2868 = vmatpush.bf16.msrb.mxu2 %v4344_v25  ;;  %v4382_v25 = vld [vmem:[#allocation3 + $0x8c0] sm:$0xff] }
  0xfd   :  { %2881 = vmatpush.bf16.msrb.mxu3 %v4352_v26  ;;  %v91_v26 = vld.sshfl [vmem:[#allocation1] sm:$0xff pattern:$0x73625140] }
  0xfe   :  { %2843 = vmatpush.bf16.msrb.mxu0 %v4327_v28  ;;  %v93_v28 = vld.sshfl [vmem:[#allocation1 + $0x10] sm:$0xff pattern:$0x73625140] }
  0xff   :  { %2856 = vmatpush.bf16.msrb.mxu1 %v4335_v29  ;;  %v94_v29 = vld.sshfl [vmem:[#allocation1 + $0x18] sm:$0xff pattern:$0x73625140]  ;;  %v165_v32 = vpack.c.bf16 %v93_v28, %v93_v28 }
 0x100   :  { %2869 = vmatpush.bf16.msrb.mxu2 %v4343_v30  ;;  %v163_v30 = vpack.c.bf16 %v91_v26, %v91_v26  ;;  %v166_v33 = vpack.c.bf16 %v94_v29, %v94_v29 }
 0x101   :  { %2882 = vmatpush.bf16.msrb.mxu3 %v4351_v31  ;;  %v164_v31 = vpack.c.bf16 %v92_v27, %v92_v27 }
 0x102   :  { %2844 = vmatpush.bf16.msrb.mxu0 %v4326_v34  ;;  %v2638_v58 = vpop.f32.mrf.mxu0 }
 0x103   :  { %2857 = vmatpush.bf16.msrb.mxu1 %v4334_v35  ;;  %v2639_v59 = vadd.f32 %v2638_v58, %v4502_v21  ;;  %v2651_v62 = vpop.f32.mrf.mxu1  ;;  %v4358_v21 = vld [vmem:[#allocation3 + $0x800] sm:$0xff] }
 0x104   :  { %2870 = vmatpush.bf16.msrb.mxu2 %v4342_v36 }
 0x105   :  { %2883 = vmatpush.bf16.msrb.mxu3 %v4350_v37  ;;  %2845 = vmatmul.bf16.vlgmr.msrb.gmra.mxu0 %v159_v46  ;;  %v2652_v1 = vadd.f32 %v2651_v62, %v2639_v59 }
 0x106   :  { %2889 = vmatpush.bf16.msra.mxu0 %v4365_v38  ;;  %2858 = vmatmul.bf16.vlgmr.msrb.gmra.mxu1 %v160_v48 }
 0x107   :  { %2902 = vmatpush.bf16.msra.mxu1 %v4373_v39  ;;  %2871 = vmatmul.bf16.vlgmr.msrb.gmra.mxu2 %v161_v47 }
 0x108   :  { %2915 = vmatpush.bf16.msra.mxu2 %v4381_v44  ;;  %2884 = vmatmul.bf16.vlgmr.msrb.gmra.mxu3 %v162_v49 }
 0x109   :  { %2928 = vmatpush.bf16.msra.mxu3 %v4389_v45 }
 0x10a   :  { %2890 = vmatpush.bf16.msra.mxu0 %v4364_v50  ;;  %v2664_v6 = vpop.f32.mrf.mxu2  ;;  %v2640_v9 = vpop.f32.mrf.mxu0 }
 0x10b   :  { %2903 = vmatpush.bf16.msra.mxu1 %v4372_v51  ;;  %v2665_v7 = vadd.f32 %v2664_v6, %v2652_v1  ;;  %v2677_v8 = vpop.f32.mrf.mxu3  ;;  %v2653_v13 = vpop.f32.mrf.mxu1 }
 0x10c   :  { %2916 = vmatpush.bf16.msra.mxu2 %v4380_v52 }
 0x10d   :  { %2929 = vmatpush.bf16.msra.mxu3 %v4388_v53  ;;  %v2678_v10 = vadd.f32 %v2677_v8, %v2665_v7 }
 0x10e   :  { %2891 = vmatpush.bf16.msra.mxu0 %v4363_v54 }
 0x10f   :  { %2904 = vmatpush.bf16.msra.mxu1 %v4371_v55 }
 0x110   :  { %2917 = vmatpush.bf16.msra.mxu2 %v4379_v56 }
 0x111   :  { %2930 = vmatpush.bf16.msra.mxu3 %v4387_v57 }
 0x112   :  { %2892 = vmatpush.bf16.msra.mxu0 %v4362_v60  ;;  %v2666_v20 = vpop.f32.mrf.mxu2 }
 0x113   :  { %2905 = vmatpush.bf16.msra.mxu1 %v4370_v61  ;;  %v2679_v22 = vpop.f32.mrf.mxu3 }
 0x114   :  { %2918 = vmatpush.bf16.msra.mxu2 %v4378_v63 }
 0x115   :  { %2931 = vmatpush.bf16.msra.mxu3 %v4386_v0 }
 0x116   :  { %2893 = vmatpush.bf16.msra.mxu0 %v4361_v2 }
 0x117   :  { %2906 = vmatpush.bf16.msra.mxu1 %v4369_v3 }
 0x118   :  { %2919 = vmatpush.bf16.msra.mxu2 %v4377_v4 }
 0x119   :  { %2932 = vmatpush.bf16.msra.mxu3 %v4385_v5 }
 0x11a   :  { %2894 = vmatpush.bf16.msra.mxu0 %v4360_v11 }
 0x11b   :  { %2907 = vmatpush.bf16.msra.mxu1 %v4368_v12 }
 0x11c   :  { %2920 = vmatpush.bf16.msra.mxu2 %v4376_v14 }
 0x11d   :  { %2933 = vmatpush.bf16.msra.mxu3 %v4384_v15 }
 0x11e   :  { %2895 = vmatpush.bf16.msra.mxu0 %v4359_v16 }
 0x11f   :  { %2908 = vmatpush.bf16.msra.mxu1 %v4367_v17 }
 0x120   :  { %2921 = vmatpush.bf16.msra.mxu2 %v4375_v18 }
 0x121   :  { %2934 = vmatpush.bf16.msra.mxu3 %v4383_v19 }
 0x122   :  { %2896 = vmatpush.bf16.msra.mxu0 %v4358_v21  ;;  %v2690_v34 = vpop.f32.mrf.mxu0 }
 0x123   :  { %2909 = vmatpush.bf16.msra.mxu1 %v4366_v23  ;;  %v2691_v35 = vadd.f32 %v2690_v34, %v2678_v10  ;;  %v2703_v36 = vpop.f32.mrf.mxu1 }
 0x124   :  { %2922 = vmatpush.bf16.msra.mxu2 %v4374_v24 }
 0x125   :  { %2935 = vmatpush.bf16.msra.mxu3 %v4382_v25  ;;  %2897 = vmatmul.bf16.vlgmr.msra.gmra.mxu0 %v163_v30  ;;  %v2704_v37 = vadd.f32 %v2703_v36, %v2691_v35 }
 0x126   :  { %2910 = vmatmul.bf16.vlgmr.msra.gmra.mxu1 %v164_v31 }
 0x127   :  { %2923 = vmatmul.bf16.vlgmr.msra.gmra.mxu2 %v165_v32 }
 0x128   :  { %2936 = vmatmul.bf16.vlgmr.msra.gmra.mxu3 %v166_v33 }
 0x12a   :  { %v2716_v38 = vpop.f32.mrf.mxu2  ;;  %v2692_v41 = vpop.f32.mrf.mxu0 }
 0x12b   :  { %v2717_v39 = vadd.f32 %v2716_v38, %v2704_v37  ;;  %v2729_v40 = vpop.f32.mrf.mxu3  ;;  %v2705_v43 = vpop.f32.mrf.mxu1 }
 0x12d   :  { %v2730_v42 = vadd.f32 %v2729_v40, %v2717_v39 }
 0x132   :  { %v2718_v44 = vpop.f32.mrf.mxu2 }
 0x133   :  { %v2731_v45 = vpop.f32.mrf.mxu3 }
 0x142   :  { %v2742_v46 = vpop.f32.mrf.mxu0 }
 0x143   :  { %v2743_v47 = vadd.f32 %v2742_v46, %v2730_v42  ;;  %v2755_v48 = vpop.f32.mrf.mxu1 }
 0x145   :  { %v2756_v49 = vadd.f32 %v2755_v48, %v2743_v47 }
 0x14a   :  { %v2768_v50 = vpop.f32.mrf.mxu2  ;;  %v2744_v53 = vpop.f32.mrf.mxu0 }
 0x14b   :  { %v2769_v51 = vadd.f32 %v2768_v50, %v2756_v49  ;;  %v2781_v52 = vpop.f32.mrf.mxu3  ;;  %v2757_v55 = vpop.f32.mrf.mxu1 }
 0x14d   :  { %v2782_v54 = vadd.f32 %v2781_v52, %v2769_v51 }
 0x152   :  { %v2770_v56 = vpop.f32.mrf.mxu2 }
 0x153   :  { %v2783_v57 = vpop.f32.mrf.mxu3 }
 0x162   :  { %v2794_v58 = vpop.f32.mrf.mxu0 }
 0x163   :  { %v2807_v59 = vpop.f32.mrf.mxu1  ;;  %v2795_v5 = vadd.f32 %v2794_v58, %v2782_v54 }
 0x165   :  { %v2808_v9 = vadd.f32 %v2807_v59, %v2795_v5 }
 0x16a   :  { %v2820_v60 = vpop.f32.mrf.mxu2  ;;  %v2796_v62 = vpop.f32.mrf.mxu0 }
 0x16b   :  { %v2833_v61 = vpop.f32.mrf.mxu3  ;;  %v2809_v63 = vpop.f32.mrf.mxu1  ;;  %v2821_v10 = vadd.f32 %v2820_v60, %v2808_v9 }
 0x16d   :  { %v2834_v13 = vadd.f32 %v2833_v61, %v2821_v10 }
 0x172   :  { %v2822_v0 = vpop.f32.mrf.mxu2 }
 0x173   :  { %v2835_v1 = vpop.f32.mrf.mxu3 }
 0x182   :  { %v2846_v2 = vpop.f32.mrf.mxu0 }
 0x183   :  { %v2859_v3 = vpop.f32.mrf.mxu1  ;;  %v2847_v14 = vadd.f32 %v2846_v2, %v2834_v13 }
 0x185   :  { %v2860_v15 = vadd.f32 %v2859_v3, %v2847_v14 }
 0x18a   :  { %v2872_v4 = vpop.f32.mrf.mxu2  ;;  %v2848_v7 = vpop.f32.mrf.mxu0 }
 0x18b   :  { %v2885_v6 = vpop.f32.mrf.mxu3  ;;  %v2861_v8 = vpop.f32.mrf.mxu1  ;;  %v2873_v16 = vadd.f32 %v2872_v4, %v2860_v15 }
 0x18d   :  { %v2886_v17 = vadd.f32 %v2885_v6, %v2873_v16 }
 0x192   :  { %v2874_v11 = vpop.f32.mrf.mxu2 }
 0x193   :  { %v2887_v12 = vpop.f32.mrf.mxu3 }
 0x1a2   :  { %v2898_v18 = vpop.f32.mrf.mxu0 }
 0x1a3   :  { %v2911_v19 = vpop.f32.mrf.mxu1  ;;  %v2899_v20 = vadd.f32 %v2898_v18, %v2886_v17 }
 0x1a5   :  { %v2912_v21 = vadd.f32 %v2911_v19, %v2899_v20 }
 0x1aa   :  { %v2924_v22 = vpop.f32.mrf.mxu2  ;;  %v2900_v25 = vpop.f32.mrf.mxu0 }
 0x1ab   :  { %v2937_v23 = vpop.f32.mrf.mxu3  ;;  %v2925_v24 = vadd.f32 %v2924_v22, %v2912_v21  ;;  %v2913_v26 = vpop.f32.mrf.mxu1 }
 0x1ad   :  { %v2938_v27 = vadd.f32 %v2937_v23, %v2925_v24 }
 0x1af   :  { %v2941_v28 = vsub.f32 %v2938_v27, %v2938_v27 }
 0x1b1   :  { %v2942_v29 = vadd.f32 1.0, %v2941_v28 }
 0x1b2   :  { %v2926_v30 = vpop.f32.mrf.mxu2 }
 0x1b3   :  { %v2939_v31 = vpop.f32.mrf.mxu3  ;;  %2944 = vst.msk [vmem:[%s4514_s3] sm:$0x3] %vm2943_vm0, %v2942_v29 }
 0x1b4   :  { %2949 = vsyncpa [#allocation4], 1 }

</bundles_post_ra>
